<compile_context>
chip_gen: v6e
topology: v6e:2x2x1
jax: 0.10.0
libtpu: 0.0.40
codegen_flags: <defaults>
</compile_context>

<pallas_src>
import functools

import jax
import jax.numpy as jnp
from jax.experimental import pallas as pl
from jax.experimental.pallas import tpu as pltpu

FEAT = 100  # encoder output channels == Linear(100, 1) input width


def _pick_hw_tile(hw, bc_pad, target_bytes=4 << 20, min_tile=512, max_tile=16384):
    """Lane tile (multiple of 128) sized so one [bc_pad, hw_tile] f32 block ~ target_bytes."""
    hw_pad = -(-hw // 128) * 128
    t = (target_bytes // (bc_pad * 4)) // 128 * 128
    t = max(min_tile, min(t, max_tile))
    return min(t, hw_pad)


def _deepfake_kernel(x_ref, sel_ref, o_ref, acc_ref, *,
                     hw, hw_tile, bc, n_chunks, needs_mask):
    # x_ref  : [B*C, hw_tile]  one spatial tile of all (batch, channel) rows
    # sel_ref: [B, B*C]        folded head: sel[b, b*C+c] = (w_enc @ w_fc)[c] / HW
    # o_ref  : [B, 1]          partial logits of this parallel slot (no bias)
    # acc_ref: [B*C, 128] f32  lane-dense running spatial sum
    p = pl.program_id(0)  # parallel slot (one per TensorCore on v7x)
    h = pl.program_id(1)  # spatial step within this slot

    @pl.when(h == 0)
    def _zero():
        acc_ref[...] = jnp.zeros_like(acc_ref)

    def accumulate(masked, base):
        partial = acc_ref[...]                                        # [bc, 128]
        lane = (jax.lax.broadcasted_iota(jnp.int32, (bc, 128), 1)
                if masked else None)
        for k in range(n_chunks):                                     # static unroll
            chunk = x_ref[:, k * 128:(k + 1) * 128]                   # [bc, 128]
            if masked:
                valid = (base + k * 128 + lane) < hw
                chunk = jnp.where(valid, chunk, 0.0)
            partial = partial + chunk
        acc_ref[...] = partial

    if needs_mask:
        # Logical (unclamped) global element offset of this tile; tiles that are
        # partially or fully past HW get their invalid lanes masked to zero.
        base = (p * pl.num_programs(1) + h) * hw_tile
        interior = (base + hw_tile) <= hw

        @pl.when(interior)
        def _full():
            accumulate(False, base)

        @pl.when(jnp.logical_not(interior))
        def _edge():
            accumulate(True, base)
    else:
        accumulate(False, 0)

    @pl.when(h == pl.num_programs(1) - 1)
    def _finalize():
        # Folded linear head (pool + encoder 1x1 conv + fc, bias added in wrapper):
        # logits_p[b] = sum_lanes (sel @ acc)[b, :]
        tmp = jnp.dot(sel_ref[...], acc_ref[...],
                      preferred_element_type=jnp.float32)             # [B, 128]
        o_ref[...] = jnp.sum(tmp, axis=-1, keepdims=True).astype(o_ref.dtype)


def deepfake_classifier_forward(x_nchw, w_enc, b_enc, w_fc, b_fc, *, max_hw_tile=16384):
    """x_nchw: [B, C, H, W] f32 -> logits [B, 1] f32.

    w_enc: [C, 100] encoder 1x1-conv weight, b_enc: [100]
    w_fc : [100, 1] fc weight (transposed vs torch's [1, 100]), b_fc: [1]
    """
    B, C, H, W = x_nchw.shape
    HW = H * W
    BC = B * C
    bc_pad = -(-BC // 8) * 8

    hw_tile = _pick_hw_tile(HW, bc_pad, max_tile=max_hw_tile)
    n_hw = pl.cdiv(HW, hw_tile)              # total spatial tiles
    n_par = 2 if n_hw >= 2 else 1            # 2 independent half-sums (v7x: 1 per TC)
    steps = pl.cdiv(n_hw, n_par)             # inner ("arbitrary") steps per slot
    n_chunks = hw_tile // 128
    needs_mask = (HW % hw_tile != 0) or (n_par * steps != n_hw)

    # Free contiguous reshape: NCHW -> [B*C, H*W] (no transpose, no extra HBM pass).
    x_flat = x_nchw.reshape(BC, HW)

    # Fold the whole linear head (valid only because the encoder stub is linear):
    #   logits = mean_hw(x) @ w_enc @ w_fc + (b_enc @ w_fc + b_fc)
    w_comb = (w_enc @ w_fc).reshape(C) * (1.0 / HW)            # [C]
    b_comb = (b_enc @ w_fc).reshape(1) + b_fc.reshape(1)       # [1]
    sel = jnp.kron(jnp.eye(B, dtype=jnp.float32), w_comb.reshape(1, C))  # [B, B*C]

    kernel = functools.partial(
        _deepfake_kernel, hw=HW, hw_tile=hw_tile, bc=BC,
        n_chunks=n_chunks, needs_mask=needs_mask)

    block_bytes = bc_pad * hw_tile * 4
    vmem_limit = int(min(48 << 20, max(16 << 20, 4 * block_bytes + (2 << 20))))

    partials = pl.pallas_call(
        kernel,
        out_shape=jax.ShapeDtypeStruct((n_par, B, 1), jnp.float32),
        grid_spec=pltpu.PrefetchScalarGridSpec(
            num_scalar_prefetch=0,
            grid=(n_par, steps),
            in_specs=[
                # Clamp the tile index so a (possibly) fully-out-of-range last
                # tile re-reads a valid tile; its contribution is masked to 0.
                pl.BlockSpec((BC, hw_tile),
                             lambda p, h: (0, jnp.minimum(p * steps + h, n_hw - 1))),
                pl.BlockSpec((B, BC), lambda p, h: (0, 0)),
            ],
            out_specs=pl.BlockSpec((None, B, 1), lambda p, h: (p, 0, 0)),
            scratch_shapes=[pltpu.VMEM((BC, 128), jnp.float32)],
        ),
        compiler_params=pltpu.CompilerParams(
            dimension_semantics=("parallel", "arbitrary"),
            vmem_limit_bytes=vmem_limit,
        ),
    )(x_flat, sel)

    # Combine the two half-sums and add the folded bias (tiny XLA epilogue).
    return partials.sum(axis=0) + b_comb                       # [B, 1]


def _reference(x_nchw, w_enc, b_enc, w_fc, b_fc):
    B, C, H, W = x_nchw.shape
    x = jnp.transpose(x_nchw, (0, 2, 3, 1)).reshape(B, H * W, C)
    feat = jnp.einsum("bpc,cf->bpf", x, w_enc) + b_enc[None, None, :]  # encoder 1x1 conv
    pooled = jnp.mean(feat, axis=1)                                    # avg_pool(1,1) + flatten
    return pooled @ w_fc + b_fc[None, :]                               # Linear(100, 1)


def _make_case(key, B, C, H, W):
    k_x, k_we, k_be, k_wf, k_bf = jax.random.split(key, 5)
    x = jax.random.normal(k_x, (B, C, H, W), dtype=jnp.float32)
    w_enc = jax.random.normal(k_we, (C, FEAT), dtype=jnp.float32) * 0.1   # encoder 1x1 conv
    b_enc = jax.random.normal(k_be, (FEAT,), dtype=jnp.float32) * 0.1
    w_fc = jax.random.normal(k_wf, (FEAT, 1), dtype=jnp.float32) * 0.1    # Linear(100, 1)
    b_fc = jax.random.normal(k_bf, (1,), dtype=jnp.float32) * 0.1
    return x, w_enc, b_enc, w_fc, b_fc


if __name__ == "__main__":
    key = jax.random.PRNGKey(0)
    k1, k2, k3 = jax.random.split(key, 3)

    # Case 1: primary small shape (HW divisible by 128 -> unmasked fast path).
    args = _make_case(k1, 2, 4, 16, 16)
    out = jax.block_until_ready(deepfake_classifier_forward(*args))
    ref = _reference(*args)
    assert out.shape == (2, 1)
    assert jnp.allclose(out, ref, atol=2e-4, rtol=1e-4), (out, ref)

    # Case 2: multi-tile streaming + 2-slot parallel split + partial/OOB tile masking.
    args = _make_case(k2, 2, 4, 48, 48)
    out = jax.block_until_ready(deepfake_classifier_forward(*args, max_hw_tile=512))
    ref = _reference(*args)
    assert jnp.allclose(out, ref, atol=2e-4, rtol=1e-4), (out, ref)

    # Case 3: HW not a multiple of 128 and B*C not a multiple of 8.
    args = _make_case(k3, 3, 3, 15, 17)
    out = jax.block_until_ready(deepfake_classifier_forward(*args))
    ref = _reference(*args)
    assert jnp.allclose(out, ref, atol=2e-4, rtol=1e-4), (out, ref)

    print("KERNEL_OK")
</pallas_src>

<mosaic_0001>
module attributes {stable_mosaic.version = 11 : i64} {
  func.func @_deepfake_kernel(%arg0: i32, %arg1: i32, %arg2: memref<8x256xf32, #tpu.memory_space<vmem>>, %arg3: memref<2x8xf32, #tpu.memory_space<vmem>>, %arg4: memref<1x2x1xf32, #tpu.memory_space<vmem>>, %arg5: memref<8x128xf32, #tpu.memory_space<vmem>>) attributes {dimension_semantics = [#tpu.dimension_semantics<parallel>, #tpu.dimension_semantics<arbitrary>], iteration_bounds = array<i64: 1, 1>, scalar_prefetch = 0 : i64, scratch_operands = 1 : i64, tpu.core_type = #tpu.core_type<tc>, window_params = [{transform_indices = @transform_0, window_bounds = array<i64: 8, 256>}, {pipeline_mode = #tpu.pipeline_mode<synchronous>, transform_indices = @transform_1, window_bounds = array<i64: 2, 8>}, {transform_indices = @transform_2, window_bounds = array<i64: 1, 2, 1>}]} {
    %c0_i32 = arith.constant 0 : i32
    %0 = arith.cmpi eq, %arg1, %c0_i32 : i32
    %1 = arith.extui %0 : i1 to i32
    %c0_i32_0 = arith.constant 0 : i32
    %2 = arith.cmpi ne, %1, %c0_i32_0 : i32
    scf.if %2 {
      %cst = arith.constant 0.000000e+00 : f32
      %12 = vector.broadcast %cst : f32 to vector<8x128xf32>
      %c0_9 = arith.constant 0 : index
      %c0_10 = arith.constant 0 : index
      %13 = vector.load %arg5[%c0_9, %c0_10] : memref<8x128xf32, #tpu.memory_space<vmem>>, vector<8x128xf32>
      tpu.vector_store %arg5[%c0_9, %c0_10], %12 {strides = array<i32>} : memref<8x128xf32, #tpu.memory_space<vmem>>, vector<8x128xf32>,
    } else {
    }
    %c0 = arith.constant 0 : index
    %c0_1 = arith.constant 0 : index
    %3 = vector.load %arg5[%c0, %c0_1] : memref<8x128xf32, #tpu.memory_space<vmem>>, vector<8x128xf32>
    %c0_2 = arith.constant 0 : index
    %c0_3 = arith.constant 0 : index
    %4 = vector.load %arg2[%c0_2, %c0_3] : memref<8x256xf32, #tpu.memory_space<vmem>>, vector<8x128xf32>
    %5 = arith.addf %3, %4 : vector<8x128xf32>
    %c0_4 = arith.constant 0 : index
    %c128 = arith.constant 128 : index
    %6 = vector.load %arg2[%c0_4, %c128] : memref<8x256xf32, #tpu.memory_space<vmem>>, vector<8x128xf32>
    %7 = arith.addf %5, %6 : vector<8x128xf32>
    %c0_5 = arith.constant 0 : index
    %c0_6 = arith.constant 0 : index
    %8 = vector.load %arg5[%c0_5, %c0_6] : memref<8x128xf32, #tpu.memory_space<vmem>>, vector<8x128xf32>
    tpu.vector_store %arg5[%c0_5, %c0_6], %7 {strides = array<i32>} : memref<8x128xf32, #tpu.memory_space<vmem>>, vector<8x128xf32>,
    %c0_i32_7 = arith.constant 0 : i32
    %9 = arith.cmpi eq, %arg1, %c0_i32_7 : i32
    %10 = arith.extui %9 : i1 to i32
    %c0_i32_8 = arith.constant 0 : i32
    %11 = arith.cmpi ne, %10, %c0_i32_8 : i32
    scf.if %11 {
      %c0_9 = arith.constant 0 : index
      %c0_10 = arith.constant 0 : index
      %12 = vector.load %arg3[%c0_9, %c0_10] : memref<2x8xf32, #tpu.memory_space<vmem>>, vector<2x8xf32>
      %c0_11 = arith.constant 0 : index
      %c0_12 = arith.constant 0 : index
      %13 = vector.load %arg5[%c0_11, %c0_12] : memref<8x128xf32, #tpu.memory_space<vmem>>, vector<8x128xf32>
      %cst = arith.constant dense<0.000000e+00> : vector<2x128xf32>
      %14 = tpu.matmul %12, %13, %cst {dimension_numbers = #tpu.dot_dimension_numbers<[1], [0], [0], [1], [0, 0, 1, 1], [], []>} : vector<2x8xf32>, vector<8x128xf32>, vector<2x128xf32> -> vector<2x128xf32>
      %cst_13 = arith.constant dense<0.000000e+00> : vector<2xf32>
      %15 = vector.multi_reduction <add>, %14, %cst_13 [1] : vector<2x128xf32> to vector<2xf32>
      %16 = vector.shape_cast %15 : vector<2xf32> to vector<2x1xf32>
      %c0_14 = arith.constant 0 : index
      %c0_15 = arith.constant 0 : index
      %c0_16 = arith.constant 0 : index
      %17 = vector.load %arg4[%c0_14, %c0_15, %c0_16] : memref<1x2x1xf32, #tpu.memory_space<vmem>>, vector<1x2x1xf32>
      %18 = vector.shape_cast %17 : vector<1x2x1xf32> to vector<2x1xf32>
      %19 = vector.shape_cast %16 : vector<2x1xf32> to vector<1x2x1xf32>
      tpu.vector_store %arg4[%c0_14, %c0_15, %c0_16], %19 {strides = array<i32>} : memref<1x2x1xf32, #tpu.memory_space<vmem>>, vector<1x2x1xf32>,
    } else {
    }
    return
  }
  func.func @transform_0(%arg0: i32, %arg1: i32) -> (i32, i32) {
    %c1_i32 = arith.constant 1 : i32
    %0 = arith.muli %arg0, %c1_i32 : i32
    %1 = arith.addi %0, %arg1 : i32
    %c0_i32 = arith.constant 0 : i32
    %2 = arith.minsi %1, %c0_i32 : i32
    %c0_i32_0 = arith.constant 0 : i32
    %c0_i32_1 = arith.constant 0 : i32
    return %c0_i32_0, %2 : i32, i32
  }
  func.func @transform_1(%arg0: i32, %arg1: i32) -> (i32, i32) {
    %c0_i32 = arith.constant 0 : i32
    %c0_i32_0 = arith.constant 0 : i32
    %c0_i32_1 = arith.constant 0 : i32
    return %c0_i32, %c0_i32_0 : i32, i32
  }
  func.func @transform_2(%arg0: i32, %arg1: i32) -> (i32, i32, i32) {
    %c0_i32 = arith.constant 0 : i32
    %c0_i32_0 = arith.constant 0 : i32
    %c0_i32_1 = arith.constant 0 : i32
    return %arg0, %c0_i32, %c0_i32_0 : i32, i32, i32
  }
}

</mosaic_0001>

<bundles_post_ra>
// kernel: tpu_custom_call.1
= control target key start
LH: loop header
LB: loop body
LE: loop exit
PB: predicated region body
PF: predicated region fallthrough
CT: control target
= control target key end

     0   :  { %7 = vsyncpa [#allocation4], 0  ;;  %s233_s0 = inlined_call_operand.hbm [shape: f32[8,256], index: 0, kind: input, shape index: {}]   ;;  %s234_s1 = inlined_call_operand.hbm [shape: f32[2,8], index: 1, kind: input, shape index: {}]   ;;  %s235_s2 = inlined_call_operand.vmem [shape: f32[1,2,1], index: 2, kind: output, shape index: {}]  }
   0x1   :  { %8 = vsyncpa [#allocation6], 0  ;;  %s205_s9 = smov [#allocation3]   ;;  %s206_s11 = smov [#allocation5]  }
   0x2   :  { %s21_s10 = sshll.u32 %s205_s9, 4  ;;  %s31_s12 = sshll.u32 %s206_s11, 4  ;;  %s22_s10 = int_to_ptr.vmem [resolvable:$true] %s21_s10  ;;  %s32_s12 = int_to_ptr.vmem [resolvable:$true] %s31_s12 }
   0x3   :  { %s169_s13 = scalar_lea.vmem %s22_s10, 256  ;;  %p174_p1 = scmp.lt.s32.totalorder %s22_s10, %s22_s10 }
   0x4   :  { %p170_p0 = scmp.ne.s32.totalorder %s22_s10, %s169_s13  ;;  %p175_p2 = scmp.lt.s32.totalorder %s169_s13, %s169_s13 }
   0x6   :  { %p176_p3 = por %p175_p2, %p174_p1 }
   0x8   :  { %p177_p4 = pnand %p176_p3, %p170_p0 }
   0xa   :  { %180 = shalt.err (!%p177_p4)
}
   0xb   :  { %24 = dma.hbm_to_vmem [thread:$0]  %s233_s0, 256, %s22_s10, [#allocation4]  }
   0xc   :  { %s189_s16 = scalar_lea.vmem %s32_s12, 32  ;;  %p194_p6 = scmp.lt.s32.totalorder %s32_s12, %s32_s12 }
   0xd   :  { %p190_p5 = scmp.ne.s32.totalorder %s32_s12, %s189_s16  ;;  %p195_p7 = scmp.lt.s32.totalorder %s189_s16, %s189_s16 }
   0xf   :  { %p196_p8 = por %p195_p7, %p194_p6 }
  0x11   :  { %p197_p9 = pnand %p196_p8, %p190_p5 }
  0x13   :  { %200 = shalt.err (!%p197_p9)
}
  0x14   :  { %34 = dma.hbm_to_vmem [thread:$0]  %s234_s1, 32, %s32_s12, [#allocation6]  }
  0x15   :  { %201 = dma.done.wait [#allocation4], 256  }
  0x16   :  { %202 = vsyncadd [#allocation4], 4294967040 }
  0x17   :  { %203 = dma.done.wait [#allocation6], 32  }
  0x18   :  { %204 = vsyncadd [#allocation6], 4294967264  ;;  %v207_v0 = vmov 0.0   ;;  %vm208_vm0 = vmmov 0   ;;  %v51_v1 = vld [vmem:[#allocation3] sm:$0xff]  ;;  %v53_v2 = vld [vmem:[#allocation3 + $0x8] sm:$0xff] }
  0x19   :  { %152 = vmatprep.subr.mxu0 %v207_v0  ;;  %154 = vmatprep.mubr.msk.f32.mxu0 %vm208_vm0, %v207_v0  ;;  %v54_v3 = vadd.f32 %v53_v2, %v51_v1  ;;  %v59_v4 = vld [vmem:[#allocation5] sm:$0x3]  ;;  %vm61_vm1 = vcmask 64512   ;;  %vm135_vm2 = vcmask 1041408   ;;  %vm139_vm3 = vcmask 1024  }
  0x1b   :  { %153 = vmatpush3.msra.mxu0 %v54_v3 }
  0x1c   :  { %155 = vmatmul.mubr.msk.f32.vlgmr.msra.gmra.mxu0 %vm61_vm1, %v59_v4 }
  0xdc   :  { %v131_v5 = vpop.f32.mrf.mxu0 }
  0xdd   :  { %v136_v6 = vsel %vm135_vm2, %v131_v5, 0.0 }
  0xde   :  { %v156_v7 = vpop.f32.mrf.mxu0  ;;  %137 = vadd.xlane.f32.xlu0 %v136_v6 }
 0x167   :  { %v138_v8 = vpop.xlane.xlu0 %137 }
 0x168   :  { %140 = vst.msk [vmem:[%s235_s2] sm:$0x3] %vm139_vm3, %v138_v8 }
 0x169   :  { %145 = vsyncpa [#allocation4], 1 }
 0x16a   :  { %146 = vsyncpa [#allocation6], 1 }

</bundles_post_ra>
